<compile_context>
chip_gen: v7x
topology: tpu7x:2x2x1
jax: 0.10.0
libtpu: 0.0.40
codegen_flags: <defaults>
</compile_context>

<pallas_src>
import functools

import jax
import jax.numpy as jnp
from jax.experimental import pallas as pl
from jax.experimental.pallas import tpu as pltpu

_FEAT = 12 * 8 * 8  # 768, lane-friendly (6 * 128)


def _wmse_kernel(feat_ref, w_ref, out_ref, acc_ref, *,
                 batch, tile_rows, tiles_per_core):
    # feat_ref: (TB, 768) native dtype     w_ref: (TB, 1) f32
    # out_ref : (1, 8, 128) f32 (per-core partial-sum block)
    # acc_ref : (1, 1) f32 VMEM scratch accumulator
    c = pl.program_id(0)           # core / parallel axis
    i = pl.program_id(1)           # batch-tile / reduction axis

    @pl.when(i == 0)
    def _init():
        acc_ref[...] = jnp.zeros_like(acc_ref)

    feats = feat_ref[...].astype(jnp.float32)                  # (TB, 768)
    scale = jnp.sum(feats, axis=1, keepdims=True)              # (TB, 1)

    # Global row indices for this (possibly clamped / ragged) tile.
    g = c * tiles_per_core + i                                  # unclamped tile id
    row0 = g * tile_rows
    rows = jax.lax.broadcasted_iota(jnp.int32, (tile_rows, 1), 0) + row0
    valid = rows < batch

    contrib = jnp.where(valid, scale * w_ref[...], 0.0)         # (TB, 1) f32
    acc_ref[...] += jnp.sum(contrib)

    @pl.when(i == tiles_per_core - 1)
    def _finalize():
        out_ref[...] = jnp.full(out_ref.shape, acc_ref[0, 0], dtype=out_ref.dtype)


def wmse_loss(features: jax.Array, inp: jax.Array, target: jax.Array,
              *, tile_rows: int = 1024, num_cores: int = 2) -> jax.Array:
    """features: (B, 12, 8, 8); inp: (B,); target: (B,).  Returns scalar f32."""
    assert features.shape[1:] == (12, 8, 8)
    assert inp.shape[1:] == ()
    assert target.shape[1:] == ()
    B = features.shape[0]

    # Keep features in native dtype (no f32 upcast copy in HBM).
    feat_flat = features.reshape(B, _FEAT)
    # Single lane-sparse side input: w = (input - target)^2, f32.
    w = (inp.astype(jnp.float32) - target.astype(jnp.float32)) ** 2
    w = w.reshape(B, 1)

    # Tile the batch.  tile_rows is a multiple of 16 (bf16-friendly); for
    # small B use the full-array block (exempt from the (8,128) rule).
    TB = B if B <= tile_rows else tile_rows
    num_tiles = pl.cdiv(B, TB)
    num_cores = max(1, min(num_cores, num_tiles))
    tiles_per_core = pl.cdiv(num_tiles, num_cores)
    last_tile = num_tiles - 1

    def data_map(c, i):
        # Clamp so we never DMA a fully out-of-bounds block; the in-kernel
        # row mask zeroes any duplicated / padded rows.
        return (jnp.minimum(c * tiles_per_core + i, last_tile), 0)

    def out_map(c, i):
        return (c, 0, 0)   # one resident block per core, revisited over i

    kernel = functools.partial(
        _wmse_kernel, batch=B, tile_rows=TB, tiles_per_core=tiles_per_core)

    feat_bytes = feat_flat.size * feat_flat.dtype.itemsize
    cost = pl.CostEstimate(
        flops=B * (_FEAT + 3),
        transcendentals=0,
        bytes_accessed=feat_bytes + w.size * 4 + num_cores * 8 * 128 * 4,
    )

    partials = pl.pallas_call(
        kernel,
        out_shape=jax.ShapeDtypeStruct((num_cores, 8, 128), jnp.float32),
        grid_spec=pltpu.PrefetchScalarGridSpec(
            num_scalar_prefetch=0,
            grid=(num_cores, tiles_per_core),
            in_specs=[
                pl.BlockSpec((TB, _FEAT), data_map),
                pl.BlockSpec((TB, 1), data_map),
            ],
            out_specs=pl.BlockSpec((1, 8, 128), out_map),
            scratch_shapes=[pltpu.VMEM((1, 1), jnp.float32)],
        ),
        compiler_params=pltpu.CompilerParams(
            dimension_semantics=("parallel", "arbitrary")),
        cost_estimate=cost,
    )(feat_flat, w)

    # Sum per-core partials and take the mean over the *global* batch.
    return jnp.sum(partials[:, 0, 0]) / jnp.float32(B)


def _reference(features, inp, target):
    scale = jnp.sum(features.astype(jnp.float32), axis=(1, 2, 3))
    diff = inp.astype(jnp.float32) - target.astype(jnp.float32)
    return jnp.mean(scale * diff * diff)


if __name__ == "__main__":
    key = jax.random.PRNGKey(0)
    k1, k2, k3 = jax.random.split(key, 3)

    # Small-shape check (single tile, single core path).
    B = 2
    features = jax.random.normal(k1, (B, 12, 8, 8), dtype=jnp.float32)
    inp = jax.random.normal(k2, (B,), dtype=jnp.float32)
    target = jax.random.normal(k3, (B,), dtype=jnp.float32)

    loss = jax.block_until_ready(wmse_loss(features, inp, target))
    ref = _reference(features, inp, target)
    assert jnp.allclose(loss, ref, rtol=1e-5, atol=1e-5), (loss, ref)

    # Multi-tile + ragged-tile + two-"core" grid path (masking exercised).
    B2 = 37
    f2 = jax.random.normal(k1, (B2, 12, 8, 8), dtype=jnp.float32)
    i2 = jax.random.normal(k2, (B2,), dtype=jnp.float32)
    t2 = jax.random.normal(k3, (B2,), dtype=jnp.float32)

    loss2 = jax.block_until_ready(wmse_loss(f2, i2, t2, tile_rows=16))
    ref2 = _reference(f2, i2, t2)
    assert jnp.allclose(loss2, ref2, rtol=1e-5, atol=1e-5), (loss2, ref2)

    print("KERNEL_OK")
</pallas_src>

<mosaic_0001>
module attributes {stable_mosaic.version = 11 : i64} {
  func.func @_wmse_kernel(%arg0: i32, %arg1: i32, %arg2: memref<2x768xf32, #tpu.memory_space<vmem>>, %arg3: memref<2x1xf32, #tpu.memory_space<vmem>>, %arg4: memref<1x8x128xf32, #tpu.memory_space<vmem>>, %arg5: memref<1x1xf32, #tpu.memory_space<vmem>>) attributes {dimension_semantics = [#tpu.dimension_semantics<parallel>, #tpu.dimension_semantics<arbitrary>], iteration_bounds = array<i64: 1, 1>, scalar_prefetch = 0 : i64, scratch_operands = 1 : i64, tpu.core_type = #tpu.core_type<tc>, window_params = [{transform_indices = @transform_0, window_bounds = array<i64: 2, 768>}, {transform_indices = @transform_1, window_bounds = array<i64: 2, 1>}, {transform_indices = @transform_2, window_bounds = array<i64: 1, 8, 128>}]} {
    %c0_i32 = arith.constant 0 : i32
    %0 = arith.cmpi eq, %arg1, %c0_i32 : i32
    %1 = arith.extui %0 : i1 to i32
    %c0_i32_0 = arith.constant 0 : i32
    %2 = arith.cmpi ne, %1, %c0_i32_0 : i32
    scf.if %2 {
      %cst_13 = arith.constant 0.000000e+00 : f32
      %29 = vector.broadcast %cst_13 : f32 to vector<1x1xf32>
      %c0_14 = arith.constant 0 : index
      %c0_15 = arith.constant 0 : index
      %30 = vector.load %arg5[%c0_14, %c0_15] : memref<1x1xf32, #tpu.memory_space<vmem>>, vector<1x1xf32>
      tpu.vector_store %arg5[%c0_14, %c0_15], %29 {strides = array<i32>} : memref<1x1xf32, #tpu.memory_space<vmem>>, vector<1x1xf32>,
    } else {
    }
    %c0 = arith.constant 0 : index
    %c0_1 = arith.constant 0 : index
    %3 = vector.load %arg2[%c0, %c0_1] : memref<2x768xf32, #tpu.memory_space<vmem>>, vector<2x768xf32>
    %cst = arith.constant dense<0.000000e+00> : vector<2xf32>
    %4 = vector.multi_reduction <add>, %3, %cst [1] : vector<2x768xf32> to vector<2xf32>
    %5 = vector.shape_cast %4 : vector<2xf32> to vector<2x1xf32>
    %c1_i32 = arith.constant 1 : i32
    %6 = arith.muli %arg0, %c1_i32 : i32
    %7 = arith.addi %6, %arg1 : i32
    %c2_i32 = arith.constant 2 : i32
    %8 = arith.muli %7, %c2_i32 : i32
    %9 = tpu.iota {dimensions = array<i32: 0>} : vector<2x1xi32>
    %10 = vector.broadcast %8 : i32 to vector<2x1xi32>
    %11 = arith.addi %9, %10 : vector<2x1xi32>
    %c2_i32_2 = arith.constant 2 : i32
    %12 = vector.broadcast %c2_i32_2 : i32 to vector<2x1xi32>
    %13 = arith.cmpi slt, %11, %12 : vector<2x1xi32>
    %c0_3 = arith.constant 0 : index
    %c0_4 = arith.constant 0 : index
    %14 = vector.load %arg3[%c0_3, %c0_4] : memref<2x1xf32, #tpu.memory_space<vmem>>, vector<2x1xf32>
    %15 = arith.mulf %5, %14 : vector<2x1xf32>
    %cst_5 = arith.constant 0.000000e+00 : f32
    %16 = vector.broadcast %cst_5 : f32 to vector<2x1xf32>
    %17 = arith.select %13, %15, %16 : vector<2x1xi1>, vector<2x1xf32>
    %c0_6 = arith.constant 0 : index
    %c0_7 = arith.constant 0 : index
    %18 = vector.load %arg5[%c0_6, %c0_7] : memref<1x1xf32, #tpu.memory_space<vmem>>, vector<1x1xf32>
    %19 = vector.shape_cast %17 : vector<2x1xf32> to vector<1x2x1xf32>
    %cst_8 = arith.constant dense<0.000000e+00> : vector<1xf32>
    %20 = vector.multi_reduction <add>, %19, %cst_8 [1, 2] : vector<1x2x1xf32> to vector<1xf32>
    %21 = vector.shape_cast %20 : vector<1xf32> to vector<1x1x1xf32>
    %22 = vector.extract %21[0, 0, 0] : f32 from vector<1x1x1xf32>
    %23 = vector.broadcast %22 : f32 to vector<1x1xf32>
    %24 = arith.addf %18, %23 : vector<1x1xf32>
    %c0_9 = arith.constant 0 : index
    %c0_10 = arith.constant 0 : index
    %25 = vector.load %arg5[%c0_9, %c0_10] : memref<1x1xf32, #tpu.memory_space<vmem>>, vector<1x1xf32>
    tpu.vector_store %arg5[%c0_9, %c0_10], %24 {strides = array<i32>} : memref<1x1xf32, #tpu.memory_space<vmem>>, vector<1x1xf32>,
    %c0_i32_11 = arith.constant 0 : i32
    %26 = arith.cmpi eq, %arg1, %c0_i32_11 : i32
    %27 = arith.extui %26 : i1 to i32
    %c0_i32_12 = arith.constant 0 : i32
    %28 = arith.cmpi ne, %27, %c0_i32_12 : i32
    scf.if %28 {
      %c0_13 = arith.constant 0 : index
      %c0_14 = arith.constant 0 : index
      %29 = vector.load %arg5[%c0_13, %c0_14] : memref<1x1xf32, #tpu.memory_space<vmem>>, vector<1x1xf32>
      %30 = vector.extract %29[0, 0] : f32 from vector<1x1xf32>
      %31 = vector.broadcast %30 : f32 to vector<1x8x128xf32>
      %c0_15 = arith.constant 0 : index
      %c0_16 = arith.constant 0 : index
      %c0_17 = arith.constant 0 : index
      %32 = vector.load %arg4[%c0_15, %c0_16, %c0_17] : memref<1x8x128xf32, #tpu.memory_space<vmem>>, vector<1x8x128xf32>
      tpu.vector_store %arg4[%c0_15, %c0_16, %c0_17], %31 {strides = array<i32>} : memref<1x8x128xf32, #tpu.memory_space<vmem>>, vector<1x8x128xf32>,
    } else {
    }
    return
  }
  func.func @transform_0(%arg0: i32, %arg1: i32) -> (i32, i32) {
    %c1_i32 = arith.constant 1 : i32
    %0 = arith.muli %arg0, %c1_i32 : i32
    %1 = arith.addi %0, %arg1 : i32
    %c0_i32 = arith.constant 0 : i32
    %2 = arith.minsi %1, %c0_i32 : i32
    %c0_i32_0 = arith.constant 0 : i32
    %c0_i32_1 = arith.constant 0 : i32
    return %2, %c0_i32_0 : i32, i32
  }
  func.func @transform_1(%arg0: i32, %arg1: i32) -> (i32, i32) {
    %c1_i32 = arith.constant 1 : i32
    %0 = arith.muli %arg0, %c1_i32 : i32
    %1 = arith.addi %0, %arg1 : i32
    %c0_i32 = arith.constant 0 : i32
    %2 = arith.minsi %1, %c0_i32 : i32
    %c0_i32_0 = arith.constant 0 : i32
    %c0_i32_1 = arith.constant 0 : i32
    return %2, %c0_i32_0 : i32, i32
  }
  func.func @transform_2(%arg0: i32, %arg1: i32) -> (i32, i32, i32) {
    %c0_i32 = arith.constant 0 : i32
    %c0_i32_0 = arith.constant 0 : i32
    %c0_i32_1 = arith.constant 0 : i32
    return %arg0, %c0_i32, %c0_i32_0 : i32, i32, i32
  }
}

</mosaic_0001>

<bundles_post_ra>
// kernel: tpu_custom_call.1
= control target key start
LH: loop header
LB: loop body
LE: loop exit
PB: predicated region body
PF: predicated region fallthrough
CT: control target
= control target key end

     0   :  { %7 = vsyncpa [#allocation4], 0  ;;  %s281_s0 = inlined_call_operand.hbm [shape: f32[2,768], index: 0, kind: input, shape index: {}]   ;;  %s282_s1 = inlined_call_operand.vmem [shape: f32[2,1], index: 1, kind: input, shape index: {}]   ;;  %s283_s2 = inlined_call_operand.hbm [shape: f32[1,8,128], index: 2, kind: output, shape index: {}]  }
   0x1   :  { %8 = vsyncpa [#allocation5], 0  ;;  %s229_s9 = smov [#allocation3]   ;;  %s181_s13 = scalar_lea.hbm %s281_s0, 192 }
   0x2   :  { %s21_s10 = sshll.u32 %s229_s9, 4  ;;  %p182_p0 = scmp.ne.s32.totalorder %s281_s0, %s181_s13  ;;  %s22_s10 = int_to_ptr.vmem [resolvable:$true] %s21_s10 }
   0x3   :  { %p185_p1 = scmp.lt.u32.totalorder %s181_s13, %s281_s0 }
   0x5   :  { %p187_p2 = pnand %p185_p1, %p182_p0 }
   0x7   :  { %190 = shalt.err (!%p187_p2)
}
   0x8   :  { %s191_s18 = scalar_lea.vmem %s22_s10, 192  ;;  %p196_p4 = scmp.lt.s32.totalorder %s22_s10, %s22_s10 }
   0x9   :  { %p192_p3 = scmp.ne.s32.totalorder %s22_s10, %s191_s18  ;;  %p197_p5 = scmp.lt.s32.totalorder %s191_s18, %s191_s18 }
   0xb   :  { %p198_p6 = por %p197_p5, %p196_p4 }
   0xd   :  { %p199_p7 = pnand %p198_p6, %p192_p3 }
   0xf   :  { %202 = shalt.err (!%p199_p7)
}
  0x10   :  { %24 = dma.hbm_to_vmem [thread:$0]  %s281_s0, 192, %s22_s10, [#allocation4]  }
  0x11   :  { %225 = dma.done.wait [#allocation4], 192  }
  0x12   :  { %226 = vsyncadd [#allocation4], 4294967104  ;;  %v74_v0 = vlaneseq  ;;  %v230_v1 = vmov 1983009808   ;;  %v66_v6 = vld [vmem:[#allocation3] sm:$0xff]  ;;  %vm101_vm0 = vcmask 1041408  }
  0x13   :  { %v72_v2 = vunpack.c.l.s4 %v230_v1  ;;  %v70_v7 = vcombine.high %v66_v6, %v66_v6  ;;  %v171_v12 = vld.sshfl [vmem:[#allocation3 + $0x8] sm:$0x33 pattern:$0x76325410]  ;;  %v122_v25 = vld [vmem:[%s282_s1] sm:$0x3] }
  0x14   :  { %v75_v3 = vshrl.u32 %v74_v0, 7  ;;  %v94_v17 = vcombine.high %v171_v12, %v171_v12  ;;  %v109_v20 = vsel %vm101_vm0, %v171_v12, 0.0  ;;  %vm126_vm2 = vcmask 1024   ;;  %s232_s22 = smov [#allocation6]  }
  0x15   :  { %v73_v4 = vunpack.c.0.s8 %v72_v2  ;;  %vm64_vm3 = vcmask 0   ;;  %v231_v30 = vmov 0.0   ;;  %s154_s23 = sshll.u32 %s232_s22, 4  ;;  %s155_s23 = int_to_ptr.vmem [resolvable:$true] %s154_s23 }
  0x16   :  { %v111_v22 = vsel %vm101_vm0, %v94_v17, 0.0  ;;  %vm121_vm1 = vcmp.lt.s32.totalorder %v75_v3, 2  ;;  %65 = vst.msk [vmem:[#allocation2] sm:$0x1] %vm64_vm3, %v231_v30  ;;  %s203_s25 = scalar_lea.vmem %s155_s23, 128  ;;  %p208_p9 = scmp.lt.s32.totalorder %s155_s23, %s155_s23 }
  0x17   :  { %v76_v5 = vsub.s32 %v73_v4, %v75_v3  ;;  %p204_p8 = scmp.ne.s32.totalorder %s155_s23, %s203_s25  ;;  %p209_p10 = scmp.lt.s32.totalorder %s203_s25, %s203_s25 }
  0x19   :  { %v77_v8 = vrot.slane %v66_v6, %v76_v5  ;;  %v84_v9 = vrot.slane %v70_v7, %v76_v5  ;;  %p210_p11 = por %p209_p10, %p208_p9 }
  0x1b   :  { %v85_v10 = vcombine.high %v77_v8, %v77_v8  ;;  %v102_v11 = vsel %vm101_vm0, %v77_v8, 0.0  ;;  %v86_v13 = vcombine.high %v84_v9, %v84_v9  ;;  %v105_v15 = vsel %vm101_vm0, %v84_v9, 0.0  ;;  %p211_p12 = pnand %p210_p11, %p204_p8 }
  0x1d   :  { %v103_v14 = vsel %vm101_vm0, %v85_v10, 0.0  ;;  %v107_v18 = vsel %vm101_vm0, %v86_v13, 0.0  ;;  %v125_v38 = vld [vmem:[#allocation2] sm:$0x1] }
  0x1e   :  { %v104_v16 = vadd.f32 %v103_v14, %v102_v11 }
  0x20   :  { %v106_v19 = vadd.f32 %v105_v15, %v104_v16 }
  0x22   :  { %v108_v21 = vadd.f32 %v107_v18, %v106_v19 }
  0x24   :  { %v110_v23 = vadd.f32 %v109_v20, %v108_v21 }
  0x26   :  { %v112_v24 = vadd.f32 %v111_v22, %v110_v23 }
  0x28   :  { %113 = vadd.xlane.f32.xlu0 %v112_v24 }
  0xb5   :  { %v114_v26 = vpop.xlane.xlu0 %113 }
  0xb6   :  { %v123_v27 = vmul.f32 %v122_v25, %v114_v26 }
  0xb8   :  { %v124_v28 = vsel %vm121_vm1, %v123_v27, 0.0 }
  0xb9   :  { %v127_v29 = vsel %vm126_vm2, %v124_v28, 0.0 }
  0xba   :  { %128 = vadd.xlane.f32.xlu0 %v127_v29 }
 0x147   :  { %v129_v31 = vpop.xlane.xlu0 %128 }
 0x148   :  { %v130_v32 = vrot.slane %v129_v31, 4 }
 0x14a   :  { %v131_v33 = vadd.f32 %v130_v32, %v129_v31 }
 0x14c   :  { %v132_v34 = vrot.slane %v131_v33, 2 }
 0x14e   :  { %v133_v35 = vadd.f32 %v132_v34, %v131_v33 }
 0x150   :  { %v134_v36 = vrot.slane %v133_v35, 1 }
 0x152   :  { %v135_v37 = vadd.f32 %v134_v36, %v133_v35 }
 0x154   :  { %172 = vpush %v135_v37 }
 0x185   :  { %s173_s1 = spop %172 }
 0x186   :  { %v137_v39 = vstv %s173_s1 }
 0x187   :  { %v138_v40 = vadd.f32 %v137_v39, %v125_v38 }
 0x189   :  { %140 = vst.msk [vmem:[#allocation2] sm:$0x1] %vm64_vm3, %v138_v40 }
 0x190   :  { %v144_v41 = vld [vmem:[#allocation2] sm:$0x1] }
 0x191   :  { %174 = vpush %v144_v41 }
 0x1c2   :  { %s175_s24 = spop %174 }
 0x1c3   :  { %v146_v42 = vstv %s175_s24 }
 0x1c4   :  { %147 = vst [vmem:[#allocation6] sm:$0xff] %v146_v42 }
 0x1c5   :  { %214 = shalt.err (!%p211_p12)
}
 0x1c6   :  { %s215_s28 = scalar_lea.hbm %s283_s2, 128 }
 0x1c7   :  { %p216_p13 = scmp.ne.s32.totalorder %s283_s2, %s215_s28  ;;  %p219_p0 = scmp.lt.u32.totalorder %s215_s28, %s283_s2 }
 0x1c9   :  { %p221_p1 = pnand %p219_p0, %p216_p13 }
 0x1cb   :  { %224 = shalt.err (!%p221_p1)
}
 0x1cc   :  { %157 = dma.vmem_to_hbm [thread:$0]  %s155_s23, 128, %s283_s2, [#allocation5]  }
 0x1cd   :  { %227 = dma.done.wait [#allocation5], 128  }
 0x1ce   :  { %228 = vsyncadd [#allocation5], 4294967168 }
 0x1cf   :  { %161 = vsyncpa [#allocation4], 1 }
 0x1d0   :  { %162 = vsyncpa [#allocation5], 1 }

</bundles_post_ra>
